<compile_context>
chip_gen: v6e
topology: v6e:2x2x1
jax: 0.10.0
libtpu: 0.0.40
codegen_flags: <defaults>
</compile_context>

<pallas_src>
import functools

import jax
import jax.numpy as jnp
from jax import lax
from jax.experimental import pallas as pl
from jax.experimental.pallas import tpu as pltpu


def _uncertainty_head_kernel(x_ref, wcat_ref, bcat_ref, out_ref, *,
                             d_out, mid, half_range):
    # bf16 operands on the MXU, f32 accumulation.
    x = x_ref[...].astype(jnp.bfloat16)              # (TILE_B, D_in)
    w = wcat_ref[...].astype(jnp.bfloat16)           # (D_in, 2*D_out)
    acc = jnp.dot(x, w, preferred_element_type=jnp.float32) + bcat_ref[...]

    # Columns [0, d_out) -> mean head (identity).
    # Columns [d_out, 2*d_out) -> log-var head: mid + half_range * tanh(raw).
    # tanh runs on the EUP (separate bundle slot); select is cheap VPU work.
    cols = lax.broadcasted_iota(jnp.int32, acc.shape, dimension=1)
    squashed = mid + half_range * jnp.tanh(acc)
    out_ref[...] = jnp.where(cols >= d_out, squashed, acc).astype(out_ref.dtype)


def uncertainty_head(x, w_mean, b_mean, w_logvar, b_logvar,
                     log_var_min=-7.0, log_var_max=7.0, *, max_tile_b=512):
    """Pallas TPU implementation of UncertaintyHead.forward.

    x:        (B, input_dim)   float32
    w_mean:   (input_dim, output_dim)     (already transposed vs. nn.Linear.weight)
    b_mean:   (output_dim,)
    w_logvar: (input_dim, output_dim)
    b_logvar: (output_dim,)
    returns:  (mean, log_var) each (B, output_dim) float32
    """
    B, D_in = x.shape
    D_out = w_mean.shape[1]
    D_cat = 2 * D_out

    # Fuse the two heads into one weight / bias.
    w_cat = jnp.concatenate([w_mean, w_logvar], axis=1)            # (D_in, 2*D_out)
    b_cat = jnp.concatenate([b_mean, b_logvar]).reshape(1, D_cat)  # (1, 2*D_out)

    # log_var = log_var_min + (tanh+1)*0.5*range  ==  mid + half_range*tanh
    half_range = 0.5 * (float(log_var_max) - float(log_var_min))
    mid = float(log_var_min) + half_range

    # Batch tiling: one block for small B, TILE_B-row blocks otherwise.
    tile_b = B if B <= max_tile_b else max_tile_b
    grid = (pl.cdiv(B, tile_b),)

    kernel = functools.partial(
        _uncertainty_head_kernel, d_out=D_out, mid=mid, half_range=half_range)

    out = pl.pallas_call(
        kernel,
        grid=grid,
        in_specs=[
            pl.BlockSpec((tile_b, D_in), lambda i: (i, 0)),   # x: tiled over batch
            pl.BlockSpec((D_in, D_cat), lambda i: (0, 0)),    # W_cat: resident
            pl.BlockSpec((1, D_cat), lambda i: (0, 0)),       # b_cat: resident
        ],
        out_specs=pl.BlockSpec((tile_b, D_cat), lambda i: (i, 0)),
        out_shape=jax.ShapeDtypeStruct((B, D_cat), jnp.float32),
        compiler_params=pltpu.CompilerParams(
            dimension_semantics=("parallel",)),
    )(x, w_cat, b_cat)

    # Split the lane-dense slab back into the two heads (cheap XLA slices).
    mean = out[:, :D_out]
    log_var = out[:, D_out:]
    return mean, log_var


def _ref_forward(x, w_mean, b_mean, w_logvar, b_logvar,
                 log_var_min=-7.0, log_var_max=7.0, *, bf16_operands=False):
    if bf16_operands:
        xd = x.astype(jnp.bfloat16)
        wm = w_mean.astype(jnp.bfloat16)
        wv = w_logvar.astype(jnp.bfloat16)
        mean = jnp.dot(xd, wm, preferred_element_type=jnp.float32) + b_mean
        raw = jnp.dot(xd, wv, preferred_element_type=jnp.float32) + b_logvar
    else:
        mean = x @ w_mean + b_mean
        raw = x @ w_logvar + b_logvar
    rng = log_var_max - log_var_min
    log_var = log_var_min + (jnp.tanh(raw) + 1.0) * 0.5 * rng
    return mean, log_var


if __name__ == "__main__":
    key = jax.random.PRNGKey(0)
    B, D_in, D_out = 8, 32, 16

    kx, kwm, kbm, kwv, kbv = jax.random.split(key, 5)
    bound = 1.0 / (D_in ** 0.5)   # mimic nn.Linear init scale
    x = jax.random.normal(kx, (B, D_in), dtype=jnp.float32)
    w_mean = jax.random.uniform(kwm, (D_in, D_out), jnp.float32, -bound, bound)
    b_mean = jax.random.uniform(kbm, (D_out,), jnp.float32, -bound, bound)
    w_logvar = jax.random.uniform(kwv, (D_in, D_out), jnp.float32, -bound, bound)
    b_logvar = jax.random.uniform(kbv, (D_out,), jnp.float32, -bound, bound)

    mean, log_var = uncertainty_head(x, w_mean, b_mean, w_logvar, b_logvar)
    jax.block_until_ready((mean, log_var))

    # Tight check against a bf16-operand / f32-accumulate reference (matches the
    # kernel's MXU numerics).
    m_bf, lv_bf = _ref_forward(x, w_mean, b_mean, w_logvar, b_logvar,
                               bf16_operands=True)
    assert jnp.allclose(mean, m_bf, atol=1e-3, rtol=1e-3)
    assert jnp.allclose(log_var, lv_bf, atol=1e-3, rtol=1e-3)

    # Loose check against the full-f32 PyTorch-equivalent reference.
    m_f32, lv_f32 = _ref_forward(x, w_mean, b_mean, w_logvar, b_logvar)
    assert jnp.allclose(mean, m_f32, atol=5e-2, rtol=5e-2)
    assert jnp.allclose(log_var, lv_f32, atol=5e-2, rtol=5e-2)

    # Bounded log-var invariant.
    assert bool(jnp.all(log_var >= -7.0)) and bool(jnp.all(log_var <= 7.0))

    print("KERNEL_OK")
</pallas_src>

<mosaic_0001>
module attributes {stable_mosaic.version = 11 : i64} {
  func.func @_uncertainty_head_kernel(%arg0: i32, %arg1: memref<8x32xf32, #tpu.memory_space<vmem>>, %arg2: memref<32x32xf32, #tpu.memory_space<vmem>>, %arg3: memref<1x32xf32, #tpu.memory_space<vmem>>, %arg4: memref<8x32xf32, #tpu.memory_space<vmem>>) attributes {dimension_semantics = [#tpu.dimension_semantics<parallel>], iteration_bounds = array<i64: 1>, scalar_prefetch = 0 : i64, scratch_operands = 0 : i64, tpu.core_type = #tpu.core_type<tc>, window_params = [{transform_indices = @transform_0, window_bounds = array<i64: 8, 32>}, {pipeline_mode = #tpu.pipeline_mode<synchronous>, transform_indices = @transform_1, window_bounds = array<i64: 32, 32>}, {pipeline_mode = #tpu.pipeline_mode<synchronous>, transform_indices = @transform_2, window_bounds = array<i64: 1, 32>}, {transform_indices = @transform_3, window_bounds = array<i64: 8, 32>}]} {
    %c0 = arith.constant 0 : index
    %c0_0 = arith.constant 0 : index
    %0 = vector.load %arg1[%c0, %c0_0] : memref<8x32xf32, #tpu.memory_space<vmem>>, vector<8x32xf32>
    %1 = arith.truncf %0 : vector<8x32xf32> to vector<8x32xbf16>
    %c0_1 = arith.constant 0 : index
    %c0_2 = arith.constant 0 : index
    %2 = vector.load %arg2[%c0_1, %c0_2] : memref<32x32xf32, #tpu.memory_space<vmem>>, vector<32x32xf32>
    %3 = arith.truncf %2 : vector<32x32xf32> to vector<32x32xbf16>
    %cst = arith.constant dense<0.000000e+00> : vector<8x32xf32>
    %4 = tpu.matmul %1, %3, %cst {dimension_numbers = #tpu.dot_dimension_numbers<[1], [0], [0], [1], [0, 0, 1, 1], [], []>} : vector<8x32xbf16>, vector<32x32xbf16>, vector<8x32xf32> -> vector<8x32xf32>
    %c0_3 = arith.constant 0 : index
    %c0_4 = arith.constant 0 : index
    %5 = vector.load %arg3[%c0_3, %c0_4] : memref<1x32xf32, #tpu.memory_space<vmem>>, vector<1x32xf32>
    %6 = vector.broadcast %5 : vector<1x32xf32> to vector<8x32xf32>
    %7 = arith.addf %4, %6 : vector<8x32xf32>
    %8 = tpu.iota {dimensions = array<i32: 1>} : vector<8x32xi32>
    %9 = math.tanh %7 : vector<8x32xf32>
    %cst_5 = arith.constant 7.000000e+00 : f32
    %10 = vector.broadcast %cst_5 : f32 to vector<8x32xf32>
    %11 = arith.mulf %10, %9 : vector<8x32xf32>
    %cst_6 = arith.constant 0.000000e+00 : f32
    %12 = vector.broadcast %cst_6 : f32 to vector<8x32xf32>
    %13 = arith.addf %12, %11 : vector<8x32xf32>
    %c16_i32 = arith.constant 16 : i32
    %14 = vector.broadcast %c16_i32 : i32 to vector<8x32xi32>
    %15 = arith.cmpi sge, %8, %14 : vector<8x32xi32>
    %16 = arith.select %15, %13, %7 : vector<8x32xi1>, vector<8x32xf32>
    %c0_7 = arith.constant 0 : index
    %c0_8 = arith.constant 0 : index
    %17 = vector.load %arg4[%c0_7, %c0_8] : memref<8x32xf32, #tpu.memory_space<vmem>>, vector<8x32xf32>
    tpu.vector_store %arg4[%c0_7, %c0_8], %16 {strides = array<i32>} : memref<8x32xf32, #tpu.memory_space<vmem>>, vector<8x32xf32>,
    return
  }
  func.func @transform_0(%arg0: i32) -> (i32, i32) {
    %c0_i32 = arith.constant 0 : i32
    %c0_i32_0 = arith.constant 0 : i32
    return %arg0, %c0_i32 : i32, i32
  }
  func.func @transform_1(%arg0: i32) -> (i32, i32) {
    %c0_i32 = arith.constant 0 : i32
    %c0_i32_0 = arith.constant 0 : i32
    %c0_i32_1 = arith.constant 0 : i32
    return %c0_i32, %c0_i32_0 : i32, i32
  }
  func.func @transform_2(%arg0: i32) -> (i32, i32) {
    %c0_i32 = arith.constant 0 : i32
    %c0_i32_0 = arith.constant 0 : i32
    %c0_i32_1 = arith.constant 0 : i32
    return %c0_i32, %c0_i32_0 : i32, i32
  }
  func.func @transform_3(%arg0: i32) -> (i32, i32) {
    %c0_i32 = arith.constant 0 : i32
    %c0_i32_0 = arith.constant 0 : i32
    return %arg0, %c0_i32 : i32, i32
  }
}

</mosaic_0001>

<bundles_post_ra>
// kernel: tpu_custom_call.1
= control target key start
LH: loop header
LB: loop body
LE: loop exit
PB: predicated region body
PF: predicated region fallthrough
CT: control target
= control target key end

     0   :  { %8 = vsyncpa [#allocation3], 0  ;;  %s254_s0 = inlined_call_operand.hbm [shape: f32[8,32], index: 0, kind: input, shape index: {}]   ;;  %s255_s1 = inlined_call_operand.hbm [shape: f32[32,32], index: 1, kind: input, shape index: {}]   ;;  %s256_s2 = inlined_call_operand.vmem [shape: f32[1,32], index: 2, kind: input, shape index: {}]   ;;  %s257_s3 = inlined_call_operand.hbm [shape: f32[8,32], index: 3, kind: output, shape index: {}]  }
   0x1   :  { %9 = vsyncpa [#allocation6], 0 }
   0x2   :  { %10 = vsyncpa [#allocation4], 0  ;;  %s213_s12 = smov [#allocation2]   ;;  %s214_s14 = smov [#allocation5]  }
   0x3   :  { %s17_s13 = sshll.u32 %s213_s12, 4  ;;  %s26_s15 = sshll.u32 %s214_s14, 4  ;;  %s18_s13 = int_to_ptr.vmem [resolvable:$true] %s17_s13  ;;  %s27_s15 = int_to_ptr.vmem [resolvable:$true] %s26_s15 }
   0x4   :  { %s155_s16 = scalar_lea.vmem %s18_s13, 128  ;;  %p160_p1 = scmp.lt.s32.totalorder %s18_s13, %s18_s13 }
   0x5   :  { %p156_p0 = scmp.ne.s32.totalorder %s18_s13, %s155_s16  ;;  %p161_p2 = scmp.lt.s32.totalorder %s155_s16, %s155_s16 }
   0x7   :  { %p162_p3 = por %p161_p2, %p160_p1 }
   0x9   :  { %p163_p4 = pnand %p162_p3, %p156_p0 }
   0xb   :  { %166 = shalt.err (!%p163_p4)
}
   0xc   :  { %20 = dma.hbm_to_vmem [thread:$0]  %s254_s0, 128, %s18_s13, [#allocation3]  }
   0xd   :  { %s175_s19 = scalar_lea.vmem %s27_s15, 512  ;;  %p180_p6 = scmp.lt.s32.totalorder %s27_s15, %s27_s15 }
   0xe   :  { %p176_p5 = scmp.ne.s32.totalorder %s27_s15, %s175_s19  ;;  %p181_p7 = scmp.lt.s32.totalorder %s175_s19, %s175_s19 }
  0x10   :  { %p182_p8 = por %p181_p7, %p180_p6 }
  0x12   :  { %p183_p9 = pnand %p182_p8, %p176_p5 }
  0x14   :  { %186 = shalt.err (!%p183_p9)
}
  0x15   :  { %s215_s20 = smov 128   ;;  %s216_s21 = smov 8  }
  0x16   :  { %32 = dma.hbm_to_vmem [thread:$0]  %s255_s1, 512, %s27_s15, [#allocation6], %s215_s20, %s215_s20, %s216_s21  }
  0x17   :  { %207 = dma.done.wait [#allocation3], 128  }
  0x18   :  { %208 = vsyncadd [#allocation3], 4294967168 }
  0x19   :  { %209 = dma.done.wait [#allocation6], 512  }
  0x1a   :  { %210 = vsyncadd [#allocation6], 4294966784  ;;  %v217_v0 = vmov 0.0   ;;  %vm218_vm0 = vmmov 0   ;;  %v46_v1 = vld [vmem:[#allocation5 + $0x10] sm:$0xff]  ;;  %v47_v2 = vld [vmem:[#allocation5 + $0x18] sm:$0xff]  ;;  %v101_v15 = vlaneseq }
  0x1b   :  { %130 = vmatprep.subr.bf16.mxu0 %v217_v0  ;;  %134 = vmatprep.mubr.msk.bf16.mxu0 %vm218_vm0, %v217_v0  ;;  %v44_v3 = vld [vmem:[#allocation5] sm:$0xff]  ;;  %v49_v4 = vpack.c.bf16 %v47_v2, %v46_v1  ;;  %v45_v5 = vld [vmem:[#allocation5 + $0x8] sm:$0xff]  ;;  %v42_v7 = vld [vmem:[#allocation2] sm:$0xff]  ;;  %vm57_vm1 = vcmask 261120   ;;  %s219_s24 = smov [#allocation7]  }
  0x1c   :  { %v48_v6 = vpack.c.bf16 %v45_v5, %v44_v3  ;;  %v43_v8 = vpack.c.bf16 %v42_v7, %v42_v7  ;;  %v125_v9 = vld [vmem:[%s256_s2] ss:$0 sm:$0xff]  ;;  %v102_v16 = vand.u32 127, %v101_v15  ;;  %s115_s25 = sshll.u32 %s219_s24, 4  ;;  %s116_s25 = int_to_ptr.vmem [resolvable:$true] %s115_s25 }
  0x1d   :  { %131 = vmatpush3.bf16.msra.mxu0 %v49_v4  ;;  %s187_s26 = scalar_lea.vmem %s116_s25, 128  ;;  %p192_p11 = scmp.lt.s32.totalorder %s116_s25, %s116_s25 }
  0x1e   :  { %132 = vmatprep.subr.bf16.mxu0 %v217_v0  ;;  %vm106_vm2 = vcmp.ge.s32.totalorder %v102_v16, 16  ;;  %p188_p10 = scmp.ne.s32.totalorder %s116_s25, %s187_s26  ;;  %p193_p12 = scmp.lt.s32.totalorder %s187_s26, %s187_s26 }
  0x20   :  { %p194_p13 = por %p193_p12, %p192_p11 }
  0x21   :  { %133 = vmatpush3.bf16.msra.mxu0 %v48_v6 }
  0x22   :  { %p195_p0 = pnand %p194_p13, %p188_p10 }
  0x24   :  { %135 = vmatmul.mubr.msk.bf16.vlgmr.msra.gmra.mxu0 %vm57_vm1, %v43_v8 }
  0xe4   :  { %v95_v10 = vpop.f32.mrf.mxu0 }
  0xe5   :  { %v96_v11 = vadd.f32 %v125_v9, %v95_v10 }
  0xe6   :  { %v136_v12 = vpop.f32.mrf.mxu0 }
  0xe7   :  { %145 = vtanh.f32 %v96_v11 }
  0xe8   :  { %v98_v13 = vpop.f32.mrf.mxu0 }
  0xea   :  { %v137_v14 = vpop.f32.mrf.mxu0 }
  0xf4   :  { %v146_v17 = vpop.eup %145 }
  0xf5   :  { %v104_v18 = vmul.f32 7.0, %v146_v17 }
  0xf7   :  { %v107_v19 = vsel %vm106_vm2, %v104_v18, %v96_v11 }
  0xf8   :  { %108 = vst.msk [vmem:[#allocation7] sm:$0xff] %vm57_vm1, %v107_v19 }
  0xf9   :  { %198 = shalt.err (!%p195_p0)
}
  0xfa   :  { %118 = dma.vmem_to_hbm [thread:$0]  %s116_s25, 128, %s257_s3, [#allocation4]  }
  0xfb   :  { %211 = dma.done.wait [#allocation4], 128  }
  0xfc   :  { %212 = vsyncadd [#allocation4], 4294967168 }
  0xfd   :  { %122 = vsyncpa [#allocation3], 1 }
  0xfe   :  { %123 = vsyncpa [#allocation6], 1 }
  0xff   :  { %124 = vsyncpa [#allocation4], 1 }

</bundles_post_ra>
